<compile_context>
chip_gen: v7x
topology: tpu7x:2x2x1
jax: 0.10.0
libtpu: 0.0.40
codegen_flags: <defaults>
</compile_context>

<pallas_src>
import jax
import jax.numpy as jnp
from jax.experimental import pallas as pl
from jax.experimental.pallas import tpu as pltpu


# ---------------------------------------------------------------------------
# Pallas kernel: one tile of rows of the flattened NHWC feature map
# ---------------------------------------------------------------------------

def _conv1x1_kernel(x_ref, w_ref, b_ref, o_ref):
    # x_ref: (TM, Cin)   tile of the (N*H*W, Cin) channels-last feature map
    # w_ref: (Cin, Cout) full weight, channels-last
    # b_ref: (1, Cout)   bias
    # o_ref: (TM, Cout)
    acc = jnp.dot(x_ref[...], w_ref[...], preferred_element_type=jnp.float32)
    o_ref[...] = (acc + b_ref[...]).astype(o_ref.dtype)


# ---------------------------------------------------------------------------
# Wrapper: PyTorch-layout in / PyTorch-layout out
# ---------------------------------------------------------------------------

def outconv_forward(x_nchw, w_oihw, b, *, tm=256):
    """y = Conv2d(in_ch, out_ch, kernel_size=1, bias=True)(x), NCHW layouts."""
    N, Cin, H, W = x_nchw.shape
    Cout = w_oihw.shape[0]
    M = N * H * W

    # Channels-last + flatten spatial/batch -> single big-M matmul.
    x = jnp.transpose(x_nchw, (0, 2, 3, 1)).reshape(M, Cin)

    # Row-tile size: multiple of 8 (sublane), capped by the problem size.
    tm = min(tm, max(8, ((M + 7) // 8) * 8))
    Mp = ((M + tm - 1) // tm) * tm
    if Mp != M:
        x = jnp.pad(x, ((0, Mp - M), (0, 0)))

    w = w_oihw.reshape(Cout, Cin).T          # (Cin, Cout), channels-last
    b2 = b.reshape(1, Cout)

    out = pl.pallas_call(
        _conv1x1_kernel,
        out_shape=jax.ShapeDtypeStruct((Mp, Cout), jnp.float32),
        grid_spec=pltpu.PrefetchScalarGridSpec(
            num_scalar_prefetch=0,
            grid=(Mp // tm,),
            in_specs=[
                pl.BlockSpec((tm, Cin), lambda i: (i, 0)),     # row tile
                pl.BlockSpec((Cin, Cout), lambda i: (0, 0)),   # full weight
                pl.BlockSpec((1, Cout), lambda i: (0, 0)),     # bias
            ],
            out_specs=pl.BlockSpec((tm, Cout), lambda i: (i, 0)),
        ),
        compiler_params=pltpu.CompilerParams(
            dimension_semantics=("parallel",)),                # v7x: 2 TCs
    )(x, w, b2)

    out = out[:M].reshape(N, H, W, Cout)
    return jnp.transpose(out, (0, 3, 1, 2))                    # back to NCHW


# ---------------------------------------------------------------------------
# Deterministic test
# ---------------------------------------------------------------------------

if __name__ == "__main__":
    key = jax.random.PRNGKey(0)
    kx, kw, kb = jax.random.split(key, 3)

    N, in_ch, out_ch, H, W = 2, 32, 4, 16, 16
    x = jax.random.normal(kx, (N, in_ch, H, W), jnp.float32)
    # PyTorch Conv2d(out_ch, in_ch, 1, 1) weight layout; deterministic init.
    w = jax.random.normal(kw, (out_ch, in_ch, 1, 1), jnp.float32) * (
        1.0 / jnp.sqrt(jnp.float32(in_ch)))
    b = 0.1 * jax.random.normal(kb, (out_ch,), jnp.float32)

    fwd = jax.jit(outconv_forward)
    out = jax.block_until_ready(fwd(x, w, b))

    # Pure-JAX reference: 1x1 conv == channel einsum + bias.
    ref = (jnp.einsum('nchw,oc->nohw', x, w.reshape(out_ch, in_ch))
           + b[None, :, None, None])

    assert out.shape == (N, out_ch, H, W), out.shape
    assert bool(jnp.all(jnp.isfinite(out)))
    assert bool(jnp.allclose(out, ref, atol=1e-4, rtol=1e-4)), float(
        jnp.max(jnp.abs(out - ref)))
    print("KERNEL_OK")
</pallas_src>

<mosaic_0001>
module attributes {stable_mosaic.version = 11 : i64} {
  func.func @_conv1x1_kernel(%arg0: i32, %arg1: memref<256x32xf32, #tpu.memory_space<vmem>>, %arg2: memref<32x4xf32, #tpu.memory_space<vmem>>, %arg3: memref<1x4xf32, #tpu.memory_space<vmem>>, %arg4: memref<256x4xf32, #tpu.memory_space<vmem>>) attributes {dimension_semantics = [#tpu.dimension_semantics<parallel>], iteration_bounds = array<i64: 2>, scalar_prefetch = 0 : i64, scratch_operands = 0 : i64, tpu.core_type = #tpu.core_type<tc>, window_params = [{transform_indices = @transform_0, window_bounds = array<i64: 256, 32>}, {pipeline_mode = #tpu.pipeline_mode<synchronous>, transform_indices = @transform_1, window_bounds = array<i64: 32, 4>}, {pipeline_mode = #tpu.pipeline_mode<synchronous>, transform_indices = @transform_2, window_bounds = array<i64: 1, 4>}, {transform_indices = @transform_3, window_bounds = array<i64: 256, 4>}]} {
    %c0 = arith.constant 0 : index
    %c0_0 = arith.constant 0 : index
    %0 = vector.load %arg1[%c0, %c0_0] : memref<256x32xf32, #tpu.memory_space<vmem>>, vector<256x32xf32>
    %c0_1 = arith.constant 0 : index
    %c0_2 = arith.constant 0 : index
    %1 = vector.load %arg2[%c0_1, %c0_2] : memref<32x4xf32, #tpu.memory_space<vmem>>, vector<32x4xf32>
    %cst = arith.constant dense<0.000000e+00> : vector<256x4xf32>
    %2 = tpu.matmul %0, %1, %cst {dimension_numbers = #tpu.dot_dimension_numbers<[1], [0], [0], [1], [0, 0, 1, 1], [], []>} : vector<256x32xf32>, vector<32x4xf32>, vector<256x4xf32> -> vector<256x4xf32>
    %c0_3 = arith.constant 0 : index
    %c0_4 = arith.constant 0 : index
    %3 = vector.load %arg3[%c0_3, %c0_4] : memref<1x4xf32, #tpu.memory_space<vmem>>, vector<1x4xf32>
    %4 = vector.broadcast %3 : vector<1x4xf32> to vector<256x4xf32>
    %5 = arith.addf %2, %4 : vector<256x4xf32>
    %c0_5 = arith.constant 0 : index
    %c0_6 = arith.constant 0 : index
    %6 = vector.load %arg4[%c0_5, %c0_6] : memref<256x4xf32, #tpu.memory_space<vmem>>, vector<256x4xf32>
    tpu.vector_store %arg4[%c0_5, %c0_6], %5 {strides = array<i32>} : memref<256x4xf32, #tpu.memory_space<vmem>>, vector<256x4xf32>,
    return
  }
  func.func @transform_0(%arg0: i32) -> (i32, i32) {
    %c0_i32 = arith.constant 0 : i32
    %c0_i32_0 = arith.constant 0 : i32
    return %arg0, %c0_i32 : i32, i32
  }
  func.func @transform_1(%arg0: i32) -> (i32, i32) {
    %c0_i32 = arith.constant 0 : i32
    %c0_i32_0 = arith.constant 0 : i32
    %c0_i32_1 = arith.constant 0 : i32
    return %c0_i32, %c0_i32_0 : i32, i32
  }
  func.func @transform_2(%arg0: i32) -> (i32, i32) {
    %c0_i32 = arith.constant 0 : i32
    %c0_i32_0 = arith.constant 0 : i32
    %c0_i32_1 = arith.constant 0 : i32
    return %c0_i32, %c0_i32_0 : i32, i32
  }
  func.func @transform_3(%arg0: i32) -> (i32, i32) {
    %c0_i32 = arith.constant 0 : i32
    %c0_i32_0 = arith.constant 0 : i32
    return %arg0, %c0_i32 : i32, i32
  }
}

</mosaic_0001>

<bundles_post_ra>
// kernel: outconv_forward.1
= control target key start
LH: loop header
LB: loop body
LE: loop exit
PB: predicated region body
PF: predicated region fallthrough
CT: control target
= control target key end

     0   :  { %8 = vsyncpa [#allocation3], 0  ;;  %s1227_s0 = inlined_call_operand.hbm [shape: f32[512,32], index: 0, kind: input, shape index: {}]   ;;  %s1228_s1 = inlined_call_operand.vmem [shape: f32[32,4], index: 1, kind: input, shape index: {}]   ;;  %s1229_s2 = inlined_call_operand.vmem [shape: f32[1,4], index: 2, kind: input, shape index: {}]   ;;  %s1230_s3 = inlined_call_operand.vmem [shape: f32[512,4], index: 3, kind: output, shape index: {}]  }
   0x1   :  { %10 = vsyncpa [#allocation3 + $0x1], 0  ;;  %s939_s12 = smov 0   ;;  %s941_s13 = smov 0  }
   0x2   :  { %s943_s14 = smov 0   ;;  %s945_s15 = smov 0  }
   0x3 LB: > { %s658_s16 = sadd.s32 4294967295, %s914_s15   ;;  %s959_s17 = sadd.s32 1, %s914_s15   ;;  %s914_s15 = sphi %s945_s15, %s1237_s15   ;;  %s910_s14 = sphi %s943_s14, %s1236_s14   ;;  %s906_s13 = sphi %s941_s13, %s1235_s13   ;;  %s902_s12 = sphi %s939_s12, %s1234_s12  }
   0x4   : > { %s20_s18 = ssub.s32 %s914_s15, %s959_s17  ;;  %s23_s19 = sadd.s32 1, %s910_s14 }
   0x5   : > { %p21_p0 = scmp.eq.s32.totalorder %s20_s18, 0  ;;  %p30_p1 = scmp.ne.s32.totalorder %s910_s14, %s906_s13 }
   0x6   : > { %p31_p2 = scmp.eq.s32.totalorder %s914_s15, 0  ;;  %p36_p3 = scmp.ne.s32.totalorder %s906_s13, %s902_s12 }
   0x7   : > { %s969_s20 = scalar_select %p21_p0, %s910_s14, %s23_s19  }
   0x8   : > { %p32_p4 = por %p31_p2, %p30_p1  ;;  %p37_p5 = scmp.eq.s32.totalorder %s658_s16, 0 }
   0x9   : > { %p815_p6 = scmp.lt.s32.totalorder %s914_s15, 2  ;;  %s134_s22 = sand.u32 1, %s910_s14  }
   0xa   : > { %p974_p7 = por %p37_p5, %p36_p3  ;;  %s662_s23 = sshll.u32 %s134_s22, 8 }
   0xb   : > { %s704_s24 = sshll.u32 %s914_s15, 12  ;;  %s138_s28 = scalar_lea.vmem [#allocation2], %s662_s23 }
   0xc   : > { %s983_s27 = scalar_lea.hbm %s1227_s0, %s704_s24  ;;  %s145_s29 = sshll.u32 %s138_s28, 4  ;;  %s985_s29 = int_to_ptr.vmem [resolvable:$true] %s145_s29 }
   0xd   : > { %p987_p8 = pnand %p815_p6, %p32_p4  ;;  %s992_s4 = scalar_lea.sflag [#allocation3], %s134_s22 }
   0xe   : > { %s850_s5 = scalar_lea.hbm %s983_s27, 4096  ;;  %s855_s8 = scalar_lea.hbm %s1227_s0, 8192 }
   0xf   : > { %p851_p10 = scmp.ne.s32.totalorder %s983_s27, %s850_s5  ;;  %p852_p11 = pneg %p987_p8 }
  0x10   : > { %p856_p0 = scmp.lt.u32.totalorder %s983_s27, %s1227_s0  ;;  %p857_p1 = scmp.lt.u32.totalorder %s855_s8, %s850_s5 }
  0x11   : > { %p853_p12 = pnand %p852_p11, %p851_p10  ;;  %p859_p3 = scmp.lt.u32.totalorder %s850_s5, %s983_s27 }
  0x12   : > { %p858_p2 = por %p857_p1, %p856_p0 }
  0x13   : > { %p854_p13 = pneg %p853_p12 }
  0x14   : > { %p860_p4 = por %p859_p3, %p858_p2 }
  0x16   : > { %p861_p5 = pnand %p860_p4, %p854_p13 }
  0x18   : > { %864 = shalt.err (!%p861_p5)
}
  0x19   : > { %s865_s11 = scalar_lea.vmem %s985_s29, 4096  ;;  %s916_s12 = smov [#allocation2]  }
  0x1a   : > { %p866_p6 = scmp.ne.s32.totalorder %s985_s29, %s865_s11  ;;  %s870_s18 = sshll.u32 %s916_s12, 4  ;;  %s871_s18 = int_to_ptr.vmem [resolvable:$false] %s870_s18 }
  0x1b   : > { %s872_s19 = scalar_lea.vmem %s871_s18, 8192  ;;  %p873_p9 = scmp.lt.s32.totalorder %s985_s29, %s871_s18 }
  0x1c   : > { %p868_p10 = pnand %p866_p6, %p852_p11  ;;  %p874_p0 = scmp.lt.s32.totalorder %s872_s19, %s865_s11 }
  0x1e   : > { %p869_p12 = pneg %p868_p10  ;;  %p875_p1 = por %p874_p0, %p873_p9 }
  0x20   : > { %p876_p2 = pnand %p875_p1, %p869_p12 }
  0x22   : > { %879 = shalt.err (!%p876_p2)
}
  0x23   : > { %s917_s22 = smov 128   ;;  %s918_s23 = smov 8  }
  0x24   : > { %814 = dma.hbm_to_vmem [thread:$0]  (!%p987_p8), %s983_s27, 4096, %s985_s29, %s992_s4, %s917_s22, %s917_s22, %s918_s23  }
  0x25   : > { %p153_p11 = scmp.lt.s32.totalorder %s914_s15, 3  ;;  %p1233_p13 = scmp.ge.s32.totalorder %s914_s15, 1 }
  0x27   : > { %p154_p3 = pnand %p1233_p13, %p153_p11 }
  0x28   : > { %s159_s24 = sand.u32 (!%p154_p3), 1, %s906_s13  }
  0x29   : > { %157 = sbr.rel (%p154_p3) target bundleno = 305 (0x131), region = 32  ;;  %s666_s25 = sshll.u32 (!%p154_p3), %s159_s24, 8 }
  0x2a   : > { %s160_s26 = scalar_lea.sflag (!%p154_p3), [#allocation3], %s159_s24  ;;  %s1024_s28 = scalar_lea.vmem (!%p154_p3), [#allocation2], %s666_s25 }
  0x30   : > { %897 = dma.done.wait (%p974_p7), %s160_s26, 4096  }
  0x31   : > { %899 = vsyncadd (%p974_p7), %s160_s26, 4294963200  ;;  %vm236_vm0 = vcmask 261120   ;;  %v225_v0 = vld [vmem:[%s1228_s1] sm:$0xff]  ;;  %v226_v1 = vld [vmem:[%s1228_s1 + $0x8] sm:$0xff]  ;;  %s667_s8 = sshll.u32 %s658_s16, 5  ;;  %vm558_vm1 = vcmask 31744  }
  0x32   : > { %v227_v2 = vld [vmem:[%s1228_s1 + $0x10] sm:$0xff]  ;;  %v797_v3 = vpack.c.bf16 %v226_v1, %v225_v0  ;;  %v228_v4 = vld [vmem:[%s1228_s1 + $0x18] sm:$0xff]  ;;  %v193_v5 = vld [vmem:[%s1024_s28] sm:$0xff]  ;;  %p188_p7 = scmp.lt.s32.totalorder %s667_s8, 63 }
  0x33   : > { %v209_v6 = vld [vmem:[%s1024_s28 + $0x80] sm:$0xff]  ;;  %v801_v7 = vpack.c.bf16 %v228_v4, %v227_v2  ;;  %749 = vmatprep.mubr.msk.f32.mxu0 %vm236_vm0, %v193_v5  ;;  %v194_v8 = vld [vmem:[%s1024_s28 + $0x8] sm:$0xff]  ;;  %v195_v10 = vld [vmem:[%s1024_s28 + $0x10] sm:$0xff] }
  0x34   : > { %773 = vmatprep.mubr.msk.f32.mxu1 %vm236_vm0, %v209_v6  ;;  %798 = vmatprep.subr.bf16.mxu0 %v797_v3  ;;  %v210_v9 = vld [vmem:[%s1024_s28 + $0x88] sm:$0xff]  ;;  %v211_v11 = vld [vmem:[%s1024_s28 + $0x90] sm:$0xff]  ;;  %v196_v12 = vld [vmem:[%s1024_s28 + $0x18] sm:$0xff]  ;;  %s1239_s8 = smov (!%p188_p7, %s667_s8), 63 }
  0x35   : > { %805 = vmatprep.subr.bf16.mxu1 %v797_v3  ;;  %800 = vmatpush3.bf16.msra.mxu0 %v797_v3  ;;  %v212_v13 = vld [vmem:[%s1024_s28 + $0x98] sm:$0xff]  ;;  %v197_v14 = vld [vmem:[%s1024_s28 + $0x20] sm:$0xff]  ;;  %v198_v16 = vld [vmem:[%s1024_s28 + $0x28] sm:$0xff]  ;;  %s668_s9 = sshll.u32 %s1239_s8, 3 }
  0x36   : > { %807 = vmatpush3.bf16.msra.mxu1 %v797_v3  ;;  %802 = vmatprep.subr.bf16.mxu0 %v801_v7  ;;  %v213_v15 = vld [vmem:[%s1024_s28 + $0xa0] sm:$0xff]  ;;  %v214_v17 = vld [vmem:[%s1024_s28 + $0xa8] sm:$0xff]  ;;  %v199_v18 = vld [vmem:[%s1024_s28 + $0x30] sm:$0xff]  ;;  %s1116_s19 = scalar_lea.vmem %s1230_s3, %s668_s9 }
  0x37   : > { %806 = vmatprep.subr.bf16.mxu1 %v801_v7  ;;  %v215_v19 = vld [vmem:[%s1024_s28 + $0xb0] sm:$0xff]  ;;  %v200_v20 = vld [vmem:[%s1024_s28 + $0x38] sm:$0xff]  ;;  %v201_v22 = vld [vmem:[%s1024_s28 + $0x40] sm:$0xff] }
  0x38   : > { %v216_v21 = vld [vmem:[%s1024_s28 + $0xb8] sm:$0xff]  ;;  %v217_v23 = vld [vmem:[%s1024_s28 + $0xc0] sm:$0xff]  ;;  %v202_v24 = vld [vmem:[%s1024_s28 + $0x48] sm:$0xff] }
  0x39   : > { %804 = vmatpush3.bf16.msra.mxu0 %v801_v7  ;;  %v218_v25 = vld [vmem:[%s1024_s28 + $0xc8] sm:$0xff]  ;;  %v203_v26 = vld [vmem:[%s1024_s28 + $0x50] sm:$0xff]  ;;  %v204_v28 = vld [vmem:[%s1024_s28 + $0x58] sm:$0xff] }
  0x3a   : > { %808 = vmatpush3.bf16.msra.mxu1 %v801_v7  ;;  %v219_v27 = vld [vmem:[%s1024_s28 + $0xd0] sm:$0xff]  ;;  %v220_v29 = vld [vmem:[%s1024_s28 + $0xd8] sm:$0xff]  ;;  %v205_v30 = vld [vmem:[%s1024_s28 + $0x60] sm:$0xff] }
  0x3b   : > { %v221_v31 = vld [vmem:[%s1024_s28 + $0xe0] sm:$0xff]  ;;  %v206_v32 = vld [vmem:[%s1024_s28 + $0x68] sm:$0xff]  ;;  %v207_v34 = vld [vmem:[%s1024_s28 + $0x70] sm:$0xff] }
  0x3c   : > { %750 = vmatmul.mubr.msk.f32.vlgmr.msra.gmra.mrb[0].mxu0 %vm236_vm0, %v194_v8  ;;  %v222_v33 = vld [vmem:[%s1024_s28 + $0xe8] sm:$0xff]  ;;  %v223_v35 = vld [vmem:[%s1024_s28 + $0xf0] sm:$0xff]  ;;  %v208_v36 = vld [vmem:[%s1024_s28 + $0x78] sm:$0xff] }
  0x3d   : > { %774 = vmatmul.mubr.msk.f32.vlgmr.msra.gmra.mrb[0].mxu1 %vm236_vm0, %v210_v9  ;;  %752 = vmatprep.mubr.msk.f32.mxu0 %vm236_vm0, %v195_v10  ;;  %v224_v37 = vld [vmem:[%s1024_s28 + $0xf8] sm:$0xff]  ;;  %v1111_v38 = vld [vmem:[%s1229_s2] ss:$0 sm:$0xff] }
  0x3e   : > { %776 = vmatprep.mubr.msk.f32.mxu1 %vm236_vm0, %v211_v11 }
  0x40   : > { %753 = vmatmul.mubr.msk.f32.gmra.mrb[2].mxu0 %vm236_vm0, %v196_v12 }
  0x41   : > { %777 = vmatmul.mubr.msk.f32.gmra.mrb[2].mxu1 %vm236_vm0, %v212_v13  ;;  %755 = vmatprep.mubr.msk.f32.mxu0 %vm236_vm0, %v197_v14 }
  0x42   : > { %779 = vmatprep.mubr.msk.f32.mxu1 %vm236_vm0, %v213_v15 }
  0x44   : > { %756 = vmatmul.mubr.msk.f32.gmra.mrb[4].mxu0 %vm236_vm0, %v198_v16 }
  0x45   : > { %780 = vmatmul.mubr.msk.f32.gmra.mrb[4].mxu1 %vm236_vm0, %v214_v17  ;;  %758 = vmatprep.mubr.msk.f32.mxu0 %vm236_vm0, %v199_v18 }
  0x46   : > { %782 = vmatprep.mubr.msk.f32.mxu1 %vm236_vm0, %v215_v19 }
  0x48   : > { %759 = vmatmul.mubr.msk.f32.gmra.mrb[6].mxu0 %vm236_vm0, %v200_v20 }
  0x49   : > { %783 = vmatmul.mubr.msk.f32.gmra.mrb[6].mxu1 %vm236_vm0, %v216_v21  ;;  %761 = vmatprep.mubr.msk.f32.mxu0 %vm236_vm0, %v201_v22 }
  0x4a   : > { %785 = vmatprep.mubr.msk.f32.mxu1 %vm236_vm0, %v217_v23 }
  0x4c   : > { %762 = vmatmul.mubr.msk.f32.gmra.mrb[8].mxu0 %vm236_vm0, %v202_v24 }
  0x4d   : > { %786 = vmatmul.mubr.msk.f32.gmra.mrb[8].mxu1 %vm236_vm0, %v218_v25  ;;  %764 = vmatprep.mubr.msk.f32.mxu0 %vm236_vm0, %v203_v26 }
  0x4e   : > { %788 = vmatprep.mubr.msk.f32.mxu1 %vm236_vm0, %v219_v27 }
  0x50   : > { %765 = vmatmul.mubr.msk.f32.gmra.mrb[10].mxu0 %vm236_vm0, %v204_v28 }
  0x51   : > { %789 = vmatmul.mubr.msk.f32.gmra.mrb[10].mxu1 %vm236_vm0, %v220_v29  ;;  %767 = vmatprep.mubr.msk.f32.mxu0 %vm236_vm0, %v205_v30 }
  0x52   : > { %791 = vmatprep.mubr.msk.f32.mxu1 %vm236_vm0, %v221_v31 }
  0x54   : > { %768 = vmatmul.mubr.msk.f32.gmra.mrb[12].mxu0 %vm236_vm0, %v206_v32 }
  0x55   : > { %792 = vmatmul.mubr.msk.f32.gmra.mrb[12].mxu1 %vm236_vm0, %v222_v33  ;;  %770 = vmatprep.mubr.msk.f32.mxu0 %vm236_vm0, %v207_v34 }
  0x56   : > { %794 = vmatprep.mubr.msk.f32.mxu1 %vm236_vm0, %v223_v35 }
  0x58   : > { %771 = vmatmul.mubr.msk.f32.gmra.mrb[14].mxu0 %vm236_vm0, %v208_v36 }
  0x59   : > { %795 = vmatmul.mubr.msk.f32.gmra.mrb[14].mxu1 %vm236_vm0, %v224_v37 }
 0x10f   : > { %v751_v39 = vpop.f32.mrb[0].mxu0 }
 0x110   : > { %v775_v40 = vpop.f32.mrb[0].mxu1  ;;  %v405_v41 = vadd.f32 %v751_v39, %v1111_v38  ;;  %v399_v43 = vpop.f32.mrb[1].mxu0 }
 0x111   : > { %v485_v42 = vadd.f32 %v775_v40, %v1111_v38  ;;  %v479_v44 = vpop.f32.mrb[1].mxu1  ;;  %v400_v45 = vadd.f32 %v1111_v38, %v399_v43 }
 0x112   : > { %v480_v46 = vadd.f32 %v1111_v38, %v479_v44  ;;  %560 = vst.msk [vmem:[%s1116_s19 + $0x8] sm:$0xff] %vm558_vm1, %v405_v41 }
 0x113   : > { %576 = vst.msk [vmem:[%s1116_s19 + $0x88] sm:$0xff] %vm558_vm1, %v485_v42  ;;  %559 = vst.msk [vmem:[%s1116_s19] sm:$0xff] %vm558_vm1, %v400_v45  ;;  %v754_v47 = vpop.f32.mrb[2].mxu0 }
 0x114   : > { %575 = vst.msk [vmem:[%s1116_s19 + $0x80] sm:$0xff] %vm558_vm1, %v480_v46  ;;  %v778_v48 = vpop.f32.mrb[2].mxu1  ;;  %v415_v49 = vadd.f32 %v754_v47, %v1111_v38  ;;  %v409_v51 = vpop.f32.mrb[3].mxu0 }
 0x115   : > { %v495_v50 = vadd.f32 %v778_v48, %v1111_v38  ;;  %v489_v52 = vpop.f32.mrb[3].mxu1  ;;  %v410_v53 = vadd.f32 %v1111_v38, %v409_v51 }
 0x116   : > { %v490_v54 = vadd.f32 %v1111_v38, %v489_v52  ;;  %562 = vst.msk [vmem:[%s1116_s19 + $0x18] sm:$0xff] %vm558_vm1, %v415_v49 }
 0x117   : > { %578 = vst.msk [vmem:[%s1116_s19 + $0x98] sm:$0xff] %vm558_vm1, %v495_v50  ;;  %561 = vst.msk [vmem:[%s1116_s19 + $0x10] sm:$0xff] %vm558_vm1, %v410_v53  ;;  %v757_v55 = vpop.f32.mrb[4].mxu0 }
 0x118   : > { %577 = vst.msk [vmem:[%s1116_s19 + $0x90] sm:$0xff] %vm558_vm1, %v490_v54  ;;  %v781_v56 = vpop.f32.mrb[4].mxu1  ;;  %v425_v57 = vadd.f32 %v757_v55, %v1111_v38  ;;  %v419_v59 = vpop.f32.mrb[5].mxu0 }
 0x119   : > { %v505_v58 = vadd.f32 %v781_v56, %v1111_v38  ;;  %v499_v60 = vpop.f32.mrb[5].mxu1  ;;  %v420_v61 = vadd.f32 %v1111_v38, %v419_v59 }
 0x11a   : > { %v500_v62 = vadd.f32 %v1111_v38, %v499_v60  ;;  %564 = vst.msk [vmem:[%s1116_s19 + $0x28] sm:$0xff] %vm558_vm1, %v425_v57 }
 0x11b   : > { %580 = vst.msk [vmem:[%s1116_s19 + $0xa8] sm:$0xff] %vm558_vm1, %v505_v58  ;;  %563 = vst.msk [vmem:[%s1116_s19 + $0x20] sm:$0xff] %vm558_vm1, %v420_v61  ;;  %v760_v63 = vpop.f32.mrb[6].mxu0 }
 0x11c   : > { %579 = vst.msk [vmem:[%s1116_s19 + $0xa0] sm:$0xff] %vm558_vm1, %v500_v62  ;;  %v784_v0 = vpop.f32.mrb[6].mxu1  ;;  %v435_v1 = vadd.f32 %v760_v63, %v1111_v38  ;;  %v429_v3 = vpop.f32.mrb[7].mxu0 }
 0x11d   : > { %v515_v2 = vadd.f32 %v784_v0, %v1111_v38  ;;  %v509_v4 = vpop.f32.mrb[7].mxu1  ;;  %v430_v5 = vadd.f32 %v1111_v38, %v429_v3 }
 0x11e   : > { %v510_v6 = vadd.f32 %v1111_v38, %v509_v4  ;;  %566 = vst.msk [vmem:[%s1116_s19 + $0x38] sm:$0xff] %vm558_vm1, %v435_v1 }
 0x11f   : > { %582 = vst.msk [vmem:[%s1116_s19 + $0xb8] sm:$0xff] %vm558_vm1, %v515_v2  ;;  %565 = vst.msk [vmem:[%s1116_s19 + $0x30] sm:$0xff] %vm558_vm1, %v430_v5  ;;  %v763_v7 = vpop.f32.mrb[8].mxu0 }
 0x120   : > { %581 = vst.msk [vmem:[%s1116_s19 + $0xb0] sm:$0xff] %vm558_vm1, %v510_v6  ;;  %v787_v8 = vpop.f32.mrb[8].mxu1  ;;  %v445_v9 = vadd.f32 %v763_v7, %v1111_v38  ;;  %v439_v11 = vpop.f32.mrb[9].mxu0 }
 0x121   : > { %v525_v10 = vadd.f32 %v787_v8, %v1111_v38  ;;  %v519_v12 = vpop.f32.mrb[9].mxu1  ;;  %v440_v13 = vadd.f32 %v1111_v38, %v439_v11 }
 0x122   : > { %v520_v14 = vadd.f32 %v1111_v38, %v519_v12  ;;  %568 = vst.msk [vmem:[%s1116_s19 + $0x48] sm:$0xff] %vm558_vm1, %v445_v9 }
 0x123   : > { %584 = vst.msk [vmem:[%s1116_s19 + $0xc8] sm:$0xff] %vm558_vm1, %v525_v10  ;;  %567 = vst.msk [vmem:[%s1116_s19 + $0x40] sm:$0xff] %vm558_vm1, %v440_v13  ;;  %v766_v15 = vpop.f32.mrb[10].mxu0 }
 0x124   : > { %583 = vst.msk [vmem:[%s1116_s19 + $0xc0] sm:$0xff] %vm558_vm1, %v520_v14  ;;  %v790_v16 = vpop.f32.mrb[10].mxu1  ;;  %v455_v17 = vadd.f32 %v766_v15, %v1111_v38  ;;  %v449_v19 = vpop.f32.mrb[11].mxu0 }
 0x125   : > { %v535_v18 = vadd.f32 %v790_v16, %v1111_v38  ;;  %v529_v20 = vpop.f32.mrb[11].mxu1  ;;  %v450_v21 = vadd.f32 %v1111_v38, %v449_v19 }
 0x126   : > { %v530_v22 = vadd.f32 %v1111_v38, %v529_v20  ;;  %570 = vst.msk [vmem:[%s1116_s19 + $0x58] sm:$0xff] %vm558_vm1, %v455_v17 }
 0x127   : > { %586 = vst.msk [vmem:[%s1116_s19 + $0xd8] sm:$0xff] %vm558_vm1, %v535_v18  ;;  %569 = vst.msk [vmem:[%s1116_s19 + $0x50] sm:$0xff] %vm558_vm1, %v450_v21  ;;  %v769_v23 = vpop.f32.mrb[12].mxu0 }
 0x128   : > { %585 = vst.msk [vmem:[%s1116_s19 + $0xd0] sm:$0xff] %vm558_vm1, %v530_v22  ;;  %v793_v24 = vpop.f32.mrb[12].mxu1  ;;  %v465_v25 = vadd.f32 %v769_v23, %v1111_v38  ;;  %v459_v27 = vpop.f32.mrb[13].mxu0 }
 0x129   : > { %v545_v26 = vadd.f32 %v793_v24, %v1111_v38  ;;  %v539_v28 = vpop.f32.mrb[13].mxu1  ;;  %v460_v29 = vadd.f32 %v1111_v38, %v459_v27 }
 0x12a   : > { %v540_v30 = vadd.f32 %v1111_v38, %v539_v28  ;;  %572 = vst.msk [vmem:[%s1116_s19 + $0x68] sm:$0xff] %vm558_vm1, %v465_v25 }
 0x12b   : > { %588 = vst.msk [vmem:[%s1116_s19 + $0xe8] sm:$0xff] %vm558_vm1, %v545_v26  ;;  %571 = vst.msk [vmem:[%s1116_s19 + $0x60] sm:$0xff] %vm558_vm1, %v460_v29  ;;  %v772_v31 = vpop.f32.mrb[14].mxu0 }
 0x12c   : > { %587 = vst.msk [vmem:[%s1116_s19 + $0xe0] sm:$0xff] %vm558_vm1, %v540_v30  ;;  %v796_v32 = vpop.f32.mrb[14].mxu1  ;;  %v475_v33 = vadd.f32 %v772_v31, %v1111_v38  ;;  %v469_v35 = vpop.f32.mrb[15].mxu0 }
 0x12d   : > { %v555_v34 = vadd.f32 %v796_v32, %v1111_v38  ;;  %v549_v36 = vpop.f32.mrb[15].mxu1  ;;  %v470_v37 = vadd.f32 %v1111_v38, %v469_v35 }
 0x12e   : > { %v550_v39 = vadd.f32 %v1111_v38, %v549_v36  ;;  %574 = vst.msk [vmem:[%s1116_s19 + $0x78] sm:$0xff] %vm558_vm1, %v475_v33 }
 0x12f   : > { %590 = vst.msk [vmem:[%s1116_s19 + $0xf8] sm:$0xff] %vm558_vm1, %v555_v34  ;;  %573 = vst.msk [vmem:[%s1116_s19 + $0x70] sm:$0xff] %vm558_vm1, %v470_v37 }
 0x130   : > { %589 = vst.msk [vmem:[%s1116_s19 + $0xf0] sm:$0xff] %vm558_vm1, %v550_v39 }
 0x131 PF: > { %p13_p8 = scmp.ge.s32.totalorder %s959_s17, 4   ;;  %s1234_s12 = smov %s906_s13 }
 0x132   : > { %s1235_s13 = smov %s910_s14  ;;  %s1236_s14 = smov %s969_s20 }
 0x133   : > { %s1237_s15 = smov %s959_s17  ;;  %15 = sbr.rel (!%p13_p8) target bundleno = 3 (0x3), region = 72 }
 0x13a   :  { %613 = vsyncpa [#allocation3], 1 }
 0x13b   :  { %615 = vsyncpa [#allocation3 + $0x1], 1 }

</bundles_post_ra>
